<compile_context>
chip_gen: v6e
topology: v6e:2x2x1
jax: 0.10.0
libtpu: 0.0.40
codegen_flags: <defaults>
</compile_context>

<pallas_src>
import functools

import jax
import jax.numpy as jnp
from jax.experimental import pallas as pl
from jax.experimental.pallas import tpu as pltpu


def discriminator_kernel(x_ref, w1_ref, b1_ref, w2_ref, b2_ref, out_ref):
    # x_ref : (TILE_B, in_dim)  input batch tile (unpadded, original dtype)
    # w1_ref: (in_dim, hidden)  resident first-layer weight (MXU dtype)
    # b1_ref: (1, hidden) f32   resident first-layer bias
    # w2_ref: (1, hidden) f32   resident second-layer weight (as a row)
    # b2_ref: (1,) f32          scalar bias in SMEM
    # out_ref: (1, TILE_B) f32  lane-dense output row
    x = x_ref[...].astype(w1_ref.dtype)  # VPU cast in VMEM; no extra HBM bytes

    # linear1 on the MXU with f32 accumulation.
    h = jnp.dot(x, w1_ref[...], preferred_element_type=jnp.float32) + b1_ref[...]

    # Numerically stable softplus (matches torch.nn.Softplus):
    #   softplus(h) = max(h, 0) + log1p(exp(-|h|))
    h = jnp.maximum(h, 0.0) + jnp.log1p(jnp.exp(-jnp.abs(h)))

    # linear2 (hidden -> 1) as  w2_row @ h^T  (same dot_general pattern as the
    # flash-attention q.k^T): contracts the hidden axis and lands the batch
    # axis on lanes, so the store below is an unmasked lane-dense row.
    z = jax.lax.dot_general(
        w2_ref[...], h, (((1,), (1,)), ((), ())),
        preferred_element_type=jnp.float32,
    ) + b2_ref[0]

    # Exact sigmoid on the single (1, TILE_B) row (costs essentially nothing).
    out_ref[...] = (1.0 / (1.0 + jnp.exp(-z))).astype(out_ref.dtype)


def _round_up(n, m):
    return pl.cdiv(n, m) * m


@functools.partial(jax.jit, static_argnames=("tile_b", "mxu_dtype"))
def discriminator_forward(x, w1, b1, w2, b2, *, tile_b=2048, mxu_dtype=jnp.bfloat16):
    """x: (..., in_dim); W1: (in_dim, hidden); b1: (1, hidden); W2: (hidden, 1);
    b2: (1, 1).  Returns (..., 1) float32.

    Set mxu_dtype=jnp.float32 for exact f32 matmul operands (default bf16
    operands keep f32 accumulation / activations)."""
    lead_shape = x.shape[:-1]
    in_dim = x.shape[-1]
    x2 = x.reshape(-1, in_dim)          # nn.Linear-style leading-dim flatten
    B = x2.shape[0]
    in_dim_w, hidden = w1.shape
    assert in_dim_w == in_dim

    # --- batch tile selection ------------------------------------------------
    #  * multiple of 128 so the (1, tile_b) output row is lane-dense,
    #  * clamped so the grid keeps >= 2 steps when the batch allows (v7x has
    #    two TensorCores; the "parallel" axis shards tiles across them),
    #  * never (much) larger than the batch itself for tiny inputs.
    tile_b = max(128, _round_up(tile_b, 128))
    tile_b = min(tile_b, max(128, _round_up(pl.cdiv(B, 2), 128)))
    tile_b = min(tile_b, max(8, _round_up(B, 8)))
    num_tiles = pl.cdiv(B, tile_b)

    # Weights / biases: tiny one-time casts.  x itself is passed through
    # unpadded and uncopied; Pallas masks the ragged final batch tile.
    w1_c = w1.astype(mxu_dtype)
    b1_r = b1.astype(jnp.float32).reshape(1, hidden)
    w2_r = w2.astype(jnp.float32).reshape(1, hidden)
    b2_s = b2.astype(jnp.float32).reshape(1)

    # VMEM @ tile_b=2048, in_dim=32 f32: 2 (double-buffered) x-tiles (~0.5 MiB)
    # + h (~0.25 MiB) + tiny weights -- far below the 16/32 MiB scoped defaults
    # on v5e / v6e+v7x.  For in_dim >= ~512 together with tile_b >= 8192, set
    # pltpu.CompilerParams(vmem_limit_bytes=...) explicitly (v5e in particular).
    out_row = pl.pallas_call(
        discriminator_kernel,
        out_shape=jax.ShapeDtypeStruct((1, num_tiles * tile_b), jnp.float32),
        grid_spec=pltpu.PrefetchScalarGridSpec(
            num_scalar_prefetch=0,
            grid=(num_tiles,),
            in_specs=[
                pl.BlockSpec((tile_b, in_dim), lambda i: (i, 0)),    # x: batch-tiled
                pl.BlockSpec((in_dim, hidden), lambda i: (0, 0)),    # W1: resident
                pl.BlockSpec((1, hidden), lambda i: (0, 0)),         # b1: resident
                pl.BlockSpec((1, hidden), lambda i: (0, 0)),         # W2 row: resident
                pl.BlockSpec(memory_space=pltpu.MemorySpace.SMEM),   # b2: SMEM scalar
            ],
            out_specs=pl.BlockSpec((1, tile_b), lambda i: (0, i)),
        ),
        compiler_params=pltpu.CompilerParams(
            dimension_semantics=("parallel",),   # batch tiles shard across TCs
        ),
    )(x2, w1_c, b1_r, w2_r, b2_s)

    return out_row[0, :B].reshape(lead_shape + (1,))


def init_params(key, in_dim, hidden_dim):
    """Deterministic init mirroring nn.Linear's U(-1/sqrt(fan_in), 1/sqrt(fan_in))."""
    k1, k2, k3, k4 = jax.random.split(key, 4)
    bound1 = 1.0 / jnp.sqrt(in_dim)
    bound2 = 1.0 / jnp.sqrt(hidden_dim)
    w1 = jax.random.uniform(k1, (in_dim, hidden_dim), jnp.float32, -bound1, bound1)
    b1 = jax.random.uniform(k2, (1, hidden_dim), jnp.float32, -bound1, bound1)
    w2 = jax.random.uniform(k3, (hidden_dim, 1), jnp.float32, -bound2, bound2)
    b2 = jax.random.uniform(k4, (1, 1), jnp.float32, -bound2, bound2)
    return w1, b1, w2, b2


def _ref_forward(x, w1, b1, w2, b2):
    return jax.nn.sigmoid(jax.nn.softplus(x @ w1 + b1) @ w2 + b2)


if __name__ == "__main__":
    batch, in_dim, hidden_dim = 8, 32, 32

    key = jax.random.PRNGKey(0)
    kx, kp, kb = jax.random.split(key, 3)
    x = jax.random.normal(kx, (batch, in_dim), jnp.float32)
    w1, b1, w2, b2 = init_params(kp, in_dim, hidden_dim)

    # Small-shape check (single grid step), f32 MXU operands.  Tolerance covers
    # TPU default matmul precision on the XLA reference path.
    out = jax.block_until_ready(
        discriminator_forward(x, w1, b1, w2, b2, mxu_dtype=jnp.float32))
    ref = _ref_forward(x, w1, b1, w2, b2)
    assert out.shape == (batch, 1)
    assert jnp.allclose(out, ref, atol=5e-3, rtol=0.0), (
        float(jnp.max(jnp.abs(out - ref))))

    # Multi-tile check: B=1000 -> tile_b=512, grid=(2,), ragged final tile,
    # default bf16 MXU operands (f32 accumulation / activations).
    big_b = 1000
    xb = jax.random.normal(kb, (big_b, in_dim), jnp.float32)
    outb = jax.block_until_ready(discriminator_forward(xb, w1, b1, w2, b2))
    refb = _ref_forward(xb, w1, b1, w2, b2)
    assert outb.shape == (big_b, 1)
    assert jnp.allclose(outb, refb, atol=1e-2, rtol=0.0), (
        float(jnp.max(jnp.abs(outb - refb))))

    print("KERNEL_OK")
</pallas_src>

<mosaic_0001>
module attributes {stable_mosaic.version = 11 : i64} {
  func.func @discriminator_kernel(%arg0: i32, %arg1: memref<8x32xf32, #tpu.memory_space<vmem>>, %arg2: memref<32x32xf32, #tpu.memory_space<vmem>>, %arg3: memref<1x32xf32, #tpu.memory_space<vmem>>, %arg4: memref<1x32xf32, #tpu.memory_space<vmem>>, %arg5: memref<1xf32, #tpu.memory_space<smem>>, %arg6: memref<1x8xf32, #tpu.memory_space<vmem>>) attributes {dimension_semantics = [#tpu.dimension_semantics<parallel>], iteration_bounds = array<i64: 1>, scalar_prefetch = 0 : i64, scratch_operands = 0 : i64, tpu.core_type = #tpu.core_type<tc>, window_params = [{transform_indices = @transform_0, window_bounds = array<i64: 8, 32>}, {pipeline_mode = #tpu.pipeline_mode<synchronous>, transform_indices = @transform_1, window_bounds = array<i64: 32, 32>}, {pipeline_mode = #tpu.pipeline_mode<synchronous>, transform_indices = @transform_2, window_bounds = array<i64: 1, 32>}, {pipeline_mode = #tpu.pipeline_mode<synchronous>, transform_indices = @transform_3, window_bounds = array<i64: 1, 32>}, {transform_indices = @transform_4, window_bounds = array<i64: 1>}, {transform_indices = @transform_5, window_bounds = array<i64: 1, 8>}]} {
    %c0 = arith.constant 0 : index
    %c0_0 = arith.constant 0 : index
    %0 = vector.load %arg1[%c0, %c0_0] : memref<8x32xf32, #tpu.memory_space<vmem>>, vector<8x32xf32>
    %c0_1 = arith.constant 0 : index
    %c0_2 = arith.constant 0 : index
    %1 = vector.load %arg2[%c0_1, %c0_2] : memref<32x32xf32, #tpu.memory_space<vmem>>, vector<32x32xf32>
    %cst = arith.constant dense<0.000000e+00> : vector<8x32xf32>
    %2 = tpu.matmul %0, %1, %cst {dimension_numbers = #tpu.dot_dimension_numbers<[1], [0], [0], [1], [0, 0, 1, 1], [], []>} : vector<8x32xf32>, vector<32x32xf32>, vector<8x32xf32> -> vector<8x32xf32>
    %c0_3 = arith.constant 0 : index
    %c0_4 = arith.constant 0 : index
    %3 = vector.load %arg3[%c0_3, %c0_4] : memref<1x32xf32, #tpu.memory_space<vmem>>, vector<1x32xf32>
    %4 = vector.broadcast %3 : vector<1x32xf32> to vector<8x32xf32>
    %5 = arith.addf %2, %4 : vector<8x32xf32>
    %cst_5 = arith.constant 0.000000e+00 : f32
    %6 = vector.broadcast %cst_5 : f32 to vector<8x32xf32>
    %7 = arith.maximumf %5, %6 : vector<8x32xf32>
    %8 = math.absf %5 : vector<8x32xf32>
    %cst_6 = arith.constant 0.000000e+00 : f32
    %9 = vector.broadcast %cst_6 : f32 to vector<8x32xf32>
    %10 = arith.subf %9, %8 : vector<8x32xf32>
    %11 = math.exp %10 : vector<8x32xf32>
    %12 = math.log1p %11 : vector<8x32xf32>
    %13 = arith.addf %7, %12 : vector<8x32xf32>
    %c0_7 = arith.constant 0 : index
    %c0_8 = arith.constant 0 : index
    %14 = vector.load %arg4[%c0_7, %c0_8] : memref<1x32xf32, #tpu.memory_space<vmem>>, vector<1x32xf32>
    %cst_9 = arith.constant dense<0.000000e+00> : vector<1x8xf32>
    %15 = tpu.matmul %14, %13, %cst_9 {dimension_numbers = #tpu.dot_dimension_numbers<[1], [1], [0], [0], [0, 0, 1, 0], [], []>} : vector<1x32xf32>, vector<8x32xf32>, vector<1x8xf32> -> vector<1x8xf32>
    %c0_10 = arith.constant 0 : index
    %16 = memref.load %arg5[%c0_10] : memref<1xf32, #tpu.memory_space<smem>>
    %17 = vector.broadcast %16 : f32 to vector<1x8xf32>
    %18 = arith.addf %15, %17 : vector<1x8xf32>
    %cst_11 = arith.constant 0.000000e+00 : f32
    %19 = vector.broadcast %cst_11 : f32 to vector<1x8xf32>
    %20 = arith.subf %19, %18 : vector<1x8xf32>
    %21 = math.exp %20 : vector<1x8xf32>
    %cst_12 = arith.constant 1.000000e+00 : f32
    %22 = vector.broadcast %cst_12 : f32 to vector<1x8xf32>
    %23 = arith.addf %22, %21 : vector<1x8xf32>
    %cst_13 = arith.constant 1.000000e+00 : f32
    %24 = vector.broadcast %cst_13 : f32 to vector<1x8xf32>
    %25 = arith.divf %24, %23 : vector<1x8xf32>
    %c0_14 = arith.constant 0 : index
    %c0_15 = arith.constant 0 : index
    %26 = vector.load %arg6[%c0_14, %c0_15] : memref<1x8xf32, #tpu.memory_space<vmem>>, vector<1x8xf32>
    tpu.vector_store %arg6[%c0_14, %c0_15], %25 {strides = array<i32>} : memref<1x8xf32, #tpu.memory_space<vmem>>, vector<1x8xf32>,
    return
  }
  func.func @transform_0(%arg0: i32) -> (i32, i32) {
    %c0_i32 = arith.constant 0 : i32
    %c0_i32_0 = arith.constant 0 : i32
    return %arg0, %c0_i32 : i32, i32
  }
  func.func @transform_1(%arg0: i32) -> (i32, i32) {
    %c0_i32 = arith.constant 0 : i32
    %c0_i32_0 = arith.constant 0 : i32
    %c0_i32_1 = arith.constant 0 : i32
    return %c0_i32, %c0_i32_0 : i32, i32
  }
  func.func @transform_2(%arg0: i32) -> (i32, i32) {
    %c0_i32 = arith.constant 0 : i32
    %c0_i32_0 = arith.constant 0 : i32
    %c0_i32_1 = arith.constant 0 : i32
    return %c0_i32, %c0_i32_0 : i32, i32
  }
  func.func @transform_3(%arg0: i32) -> (i32, i32) {
    %c0_i32 = arith.constant 0 : i32
    %c0_i32_0 = arith.constant 0 : i32
    %c0_i32_1 = arith.constant 0 : i32
    return %c0_i32, %c0_i32_0 : i32, i32
  }
  func.func @transform_4(%arg0: i32) -> i32 {
    %c0_i32 = arith.constant 0 : i32
    %c0_i32_0 = arith.constant 0 : i32
    return %c0_i32 : i32
  }
  func.func @transform_5(%arg0: i32) -> (i32, i32) {
    %c0_i32 = arith.constant 0 : i32
    %c0_i32_0 = arith.constant 0 : i32
    return %c0_i32, %arg0 : i32, i32
  }
}

</mosaic_0001>

<bundles_post_ra>
// kernel: discriminator_forward.1
= control target key start
LH: loop header
LB: loop body
LE: loop exit
PB: predicated region body
PF: predicated region fallthrough
CT: control target
= control target key end

     0   :  { %11 = vsyncpa [#allocation4], 0  ;;  %s418_s0 = inlined_call_operand.hbm [shape: f32[8,32], index: 0, kind: input, shape index: {}]   ;;  %s419_s1 = inlined_call_operand.hbm [shape: f32[32,32], index: 1, kind: input, shape index: {}]   ;;  %s420_s2 = inlined_call_operand.vmem [shape: f32[1,32], index: 2, kind: input, shape index: {}]   ;;  %s421_s3 = inlined_call_operand.vmem [shape: f32[1,32], index: 3, kind: input, shape index: {}]   ;;  %s422_s4 = inlined_call_operand.<no memory space> [shape: f32[1], index: 4, kind: input, shape index: {}]   ;;  %s423_s5 = inlined_call_operand.hbm [shape: f32[1,8], index: 5, kind: output, shape index: {}]  }
   0x1   :  { %12 = vsyncpa [#allocation7], 0 }
   0x2   :  { %13 = vsyncpa [#allocation5], 0  ;;  %s360_s18 = smov [#allocation3]   ;;  %s361_s20 = smov [#allocation6]  }
   0x3   :  { %s20_s19 = sshll.u32 %s360_s18, 4  ;;  %s29_s21 = sshll.u32 %s361_s20, 4  ;;  %s21_s19 = int_to_ptr.vmem [resolvable:$true] %s20_s19  ;;  %s30_s21 = int_to_ptr.vmem [resolvable:$true] %s29_s21 }
   0x4   :  { %s302_s22 = scalar_lea.vmem %s21_s19, 128  ;;  %p307_p1 = scmp.lt.s32.totalorder %s21_s19, %s21_s19 }
   0x5   :  { %p303_p0 = scmp.ne.s32.totalorder %s21_s19, %s302_s22  ;;  %p308_p2 = scmp.lt.s32.totalorder %s302_s22, %s302_s22 }
   0x7   :  { %p309_p3 = por %p308_p2, %p307_p1 }
   0x9   :  { %p310_p4 = pnand %p309_p3, %p303_p0 }
   0xb   :  { %313 = shalt.err (!%p310_p4)
}
   0xc   :  { %23 = dma.hbm_to_vmem [thread:$0]  %s418_s0, 128, %s21_s19, [#allocation4]  }
   0xd   :  { %s322_s25 = scalar_lea.vmem %s30_s21, 512  ;;  %p327_p6 = scmp.lt.s32.totalorder %s30_s21, %s30_s21 }
   0xe   :  { %p323_p5 = scmp.ne.s32.totalorder %s30_s21, %s322_s25  ;;  %p328_p7 = scmp.lt.s32.totalorder %s322_s25, %s322_s25 }
  0x10   :  { %p329_p8 = por %p328_p7, %p327_p6 }
  0x12   :  { %p330_p9 = pnand %p329_p8, %p323_p5 }
  0x14   :  { %333 = shalt.err (!%p330_p9)
}
  0x15   :  { %s362_s26 = smov 128   ;;  %s363_s27 = smov 8  }
  0x16   :  { %35 = dma.hbm_to_vmem [thread:$0]  %s419_s1, 512, %s30_s21, [#allocation7], %s362_s26, %s362_s26, %s363_s27  }
  0x17   :  { %354 = dma.done.wait [#allocation4], 128  }
  0x18   :  { %355 = vsyncadd [#allocation4], 4294967168 }
  0x19   :  { %356 = dma.done.wait [#allocation7], 512  }
  0x1a   :  { %357 = vsyncadd [#allocation7], 4294966784  ;;  %v364_v0 = vmov 0.0   ;;  %vm365_vm0 = vmmov 0   ;;  %v52_v1 = vld [vmem:[#allocation6 + $0x18] sm:$0xff]  ;;  %v51_v2 = vld [vmem:[#allocation6 + $0x10] sm:$0xff]  ;;  %v151_v25 = vstv %s422_s4 }
  0x1b   :  { %263 = vmatprep.subr.mxu0 %v364_v0  ;;  %271 = vmatprep.mubr.msk.f32.mxu0 %vm365_vm0, %v364_v0  ;;  %v50_v3 = vld [vmem:[#allocation6 + $0x8] sm:$0xff]  ;;  %v49_v4 = vld [vmem:[#allocation6] sm:$0xff]  ;;  %v48_v5 = vld [vmem:[#allocation3] sm:$0xff]  ;;  %vm60_vm1 = vcmask 261120   ;;  %s366_s8 = smov [#allocation8]   ;;  %vm234_vm3 = vcmask 57344  }
  0x1c   :  { %274 = vmatprep.subr.mxu1 %v364_v0  ;;  %276 = vmatprep.mubr.msk.f32.mxu1 %vm365_vm0, %v364_v0  ;;  %v252_v6 = vld [vmem:[%s420_s2] ss:$0 sm:$0xff]  ;;  %s242_s9 = sshll.u32 %s366_s8, 4  ;;  %s243_s9 = int_to_ptr.vmem [resolvable:$true] %s242_s9 }
  0x1d   :  { %264 = vmatpush3.msra.mxu0 %v52_v1  ;;  %v149_v24 = vld [vmem:[%s421_s3] sm:$0x1]  ;;  %s334_s3 = scalar_lea.vmem %s243_s9, 16  ;;  %s338_s10 = scalar_lea.vmem %s243_s9, 32 }
  0x1e   :  { %265 = vmatprep.subr.mxu0 %v364_v0  ;;  %p335_p10 = scmp.ne.s32.totalorder %s243_s9, %s334_s3  ;;  %p339_p11 = scmp.lt.s32.totalorder %s243_s9, %s243_s9 }
  0x1f   :  { %266 = vmatpush3.msra.mxu0 %v51_v2  ;;  %p340_p12 = scmp.lt.s32.totalorder %s338_s10, %s334_s3 }
  0x20   :  { %267 = vmatprep.subr.mxu0 %v364_v0 }
  0x21   :  { %268 = vmatpush3.msra.mxu0 %v50_v3  ;;  %p341_p13 = por %p340_p12, %p339_p11 }
  0x22   :  { %269 = vmatprep.subr.mxu0 %v364_v0 }
  0x23   :  { %270 = vmatpush3.msra.mxu0 %v49_v4  ;;  %p342_p0 = pnand %p341_p13, %p335_p10 }
  0x24   :  { %272 = vmatmul.mubr.msk.f32.vlgmr.msra.gmra.mxu0 %vm60_vm1, %v48_v5 }
  0xe4   :  { %v130_v7 = vpop.f32.mrf.mxu0 }
  0xe5   :  { %v131_v8 = vadd.f32 %v252_v6, %v130_v7 }
  0xe6   :  { %v273_v9 = vpop.f32.mrf.mxu0 }
  0xe7   :  { %v135_v10 = vand.u32 2147483647, %v131_v8  ;;  %v134_v21 = vmax.f32 %v131_v8, 0.0 }
  0xe9   :  { %v136_v11 = vsub.f32 0.0, %v135_v10 }
  0xeb   :  { %v137_v12 = vmul.f32 1.442695, %v136_v11 }
  0xed   :  { %286 = vpow2.f32 %v137_v12 }
  0xfa   :  { %v287_v13 = vpop.eup %286 }
  0xfb   :  { %v139_v14 = vadd.f32 1.0, %v287_v13  ;;  %v142_v15 = vmul.f32 -0.5, %v287_v13  ;;  %v145_v17 = vand.u32 2147483647, %v287_v13 }
  0xfd   :  { %288 = vlog2.f32 %v139_v14  ;;  %v143_v16 = vadd.f32 1.0, %v142_v15  ;;  %vm146_vm2 = vcmp.lt.f32.partialorder %v145_v17, 0.0004427343 }
  0xff   :  { %v144_v20 = vmul.f32 %v287_v13, %v143_v16 }
 0x10a   :  { %v289_v18 = vpop.eup %288 }
 0x10b   :  { %v141_v19 = vmul.f32 0.6931472, %v289_v18 }
 0x10d   :  { %v147_v22 = vsel %vm146_vm2, %v144_v20, %v141_v19 }
 0x10e   :  { %v148_v23 = vadd.f32 %v147_v22, %v134_v21 }
 0x110   :  { %275 = vmatpush3.xpose.msk.msra.mxu1 %vm60_vm1, %v148_v23 }
 0x113   :  { %277 = vmatmul.mubr.msk.f32.vlgmr.msra.gmra.mxu1 %vm60_vm1, %v149_v24 }
 0x1d3   :  { %v224_v26 = vpop.f32.mrf.mxu1 }
 0x1d4   :  { %v225_v27 = vadd.f32 %v224_v26, %v151_v25 }
 0x1d5   :  { %v278_v28 = vpop.f32.mrf.mxu1 }
 0x1d6   :  { %v228_v29 = vsub.f32 0.0, %v225_v27 }
 0x1d8   :  { %v229_v30 = vmul.f32 1.442695, %v228_v29 }
 0x1da   :  { %290 = vpow2.f32 %v229_v30 }
 0x1e7   :  { %v291_v31 = vpop.eup %290 }
 0x1e8   :  { %v231_v32 = vadd.f32 1.0, %v291_v31 }
 0x1ea   :  { %292 = vrcp.f32 %v231_v32 }
 0x1f7   :  { %v293_v33 = vpop.eup %292 }
 0x1f8   :  { %235 = vst.msk [vmem:[#allocation8] sm:$0x1] %vm234_vm3, %v293_v33 }
 0x1f9   :  { %345 = shalt.err (!%p342_p0)
}
 0x1fa   :  { %245 = dma.vmem_to_hbm [thread:$0]  %s243_s9, 16, %s423_s5, [#allocation5]  }
 0x1fb   :  { %358 = dma.done.wait [#allocation5], 16  }
 0x1fc   :  { %359 = vsyncadd [#allocation5], 4294967280 }
 0x1fd   :  { %249 = vsyncpa [#allocation4], 1 }
 0x1fe   :  { %250 = vsyncpa [#allocation7], 1 }
 0x1ff   :  { %251 = vsyncpa [#allocation5], 1 }

</bundles_post_ra>
